<compile_context>
chip_gen: v7x
topology: tpu7x:2x2x1
jax: 0.10.0
libtpu: 0.0.40
codegen_flags: <defaults>
</compile_context>

<pallas_src>
import math
import functools

import jax
import jax.numpy as jnp
import numpy as np
from jax.experimental import pallas as pl
from jax.experimental.pallas import tpu as pltpu


_VMEM_LIMIT = 32 * 1024 * 1024  # explicit scoped-VMEM budget (safe on v5e/v6e/v7x)


def _pick_tile(dim, pref):
    """Largest legal tile: `pref` if it divides `dim`, else the full dim."""
    if dim >= pref and dim % pref == 0:
        return pref
    return dim


# ---------------------------------------------------------------------------
# Tiled linear kernel: y = x @ Wt + b  (Wt pre-transposed, optional fused ReLU)
# ---------------------------------------------------------------------------
def _linear_kernel(x_ref, wt_ref, b_ref, o_ref, acc_ref, *, activation,
                   compute_dtype):
    k = pl.program_id(2)

    @pl.when(k == 0)
    def _():
        acc_ref[...] = jnp.zeros_like(acc_ref)

    x = x_ref[...]
    w = wt_ref[...]
    if compute_dtype is not None:          # bf16 MXU operands, fp32 accumulate
        x = x.astype(compute_dtype)
        w = w.astype(compute_dtype)
    acc_ref[...] += jnp.dot(x, w, preferred_element_type=jnp.float32)

    @pl.when(k == pl.num_programs(2) - 1)
    def _():
        y = acc_ref[...] + b_ref[...].astype(jnp.float32)
        if activation == "relu":
            y = jnp.maximum(y, 0.0)
        o_ref[...] = y.astype(o_ref.dtype)


def linear(x2d, wt, b, *, activation=None, compute_dtype=None,
           tm=256, tn=256, tk=512):
    """x2d: (M, K); wt: (K, N) pre-transposed weight; b: (N,) -> (M, N)."""
    M, K = x2d.shape
    N = wt.shape[1]
    tm = _pick_tile(M, tm)
    tn = _pick_tile(N, tn)
    tk = _pick_tile(K, tk)
    kern = functools.partial(_linear_kernel, activation=activation,
                             compute_dtype=compute_dtype)
    return pl.pallas_call(
        kern,
        out_shape=jax.ShapeDtypeStruct((M, N), x2d.dtype),
        grid=(M // tm, N // tn, K // tk),
        in_specs=[
            pl.BlockSpec((tm, tk), lambda i, j, k: (i, k)),
            pl.BlockSpec((tk, tn), lambda i, j, k: (k, j)),
            pl.BlockSpec((1, tn), lambda i, j, k: (0, j)),
        ],
        out_specs=pl.BlockSpec((tm, tn), lambda i, j, k: (i, j)),
        scratch_shapes=[pltpu.VMEM((tm, tn), jnp.float32)],
        compiler_params=pltpu.CompilerParams(
            dimension_semantics=("parallel", "parallel", "arbitrary"),
            vmem_limit_bytes=_VMEM_LIMIT),
        cost_estimate=pl.CostEstimate(
            flops=2 * M * N * K, transcendentals=0,
            bytes_accessed=4 * (M * K + K * N + M * N)),
    )(x2d, wt, b.reshape(1, N))


# ---------------------------------------------------------------------------
# LayerNorm kernel (torch semantics: unbiased std, alpha*(x-mean)/(std+eps)+beta)
# ---------------------------------------------------------------------------
def _layernorm_kernel(x_ref, a_ref, b_ref, o_ref, *, eps):
    x = x_ref[...].astype(jnp.float32)
    d = x.shape[-1]
    mean = jnp.mean(x, axis=-1, keepdims=True)
    xc = x - mean
    var = jnp.sum(xc * xc, axis=-1, keepdims=True) / (d - 1)  # unbiased (torch.std)
    y = a_ref[...] * xc / (jnp.sqrt(var) + eps) + b_ref[...]
    o_ref[...] = y.astype(o_ref.dtype)


def layer_norm(x, alpha, beta, *, eps=1e-6, tm=256):
    B, S, D = x.shape
    M = B * S
    tm = _pick_tile(M, tm)
    out = pl.pallas_call(
        functools.partial(_layernorm_kernel, eps=eps),
        out_shape=jax.ShapeDtypeStruct((M, D), x.dtype),
        grid=(M // tm,),
        in_specs=[
            pl.BlockSpec((tm, D), lambda i: (i, 0)),
            pl.BlockSpec((1, D), lambda i: (0, 0)),
            pl.BlockSpec((1, D), lambda i: (0, 0)),
        ],
        out_specs=pl.BlockSpec((tm, D), lambda i: (i, 0)),
        compiler_params=pltpu.CompilerParams(
            dimension_semantics=("parallel",),
            vmem_limit_bytes=_VMEM_LIMIT),
    )(x.reshape(M, D), alpha.reshape(1, D), beta.reshape(1, D))
    return out.reshape(B, S, D)


# ---------------------------------------------------------------------------
# Flash-style attention: online softmax over Sk tiles, no p_attn writeback.
# ---------------------------------------------------------------------------
def _flash_attn_kernel(q_ref, k_ref, v_ref, m_ref, o_ref,
                       m_sc, l_sc, acc_sc, *, scale, compute_dtype):
    kv = pl.program_id(3)

    @pl.when(kv == 0)
    def _():
        m_sc[...] = jnp.full(m_sc.shape, -jnp.inf, jnp.float32)
        l_sc[...] = jnp.zeros(l_sc.shape, jnp.float32)
        acc_sc[...] = jnp.zeros(acc_sc.shape, jnp.float32)

    q = q_ref[0, 0]
    k = k_ref[0, 0]
    v = v_ref[0, 0]
    if compute_dtype is not None:          # bf16 MXU operands, fp32 accumulate
        q = q.astype(compute_dtype)
        k = k.astype(compute_dtype)
        v = v.astype(compute_dtype)

    s = jnp.dot(q, k.T, preferred_element_type=jnp.float32) * scale
    s = jnp.where(m_ref[0, 0] == 0, jnp.float32(-1e9), s)

    m_prev = m_sc[...]
    m_new = jnp.maximum(m_prev, jnp.max(s, axis=-1, keepdims=True))
    corr = jnp.exp(m_prev - m_new)
    p = jnp.exp(s - m_new)                 # softmax math stays fp32 (VPU/EUP)
    l_sc[...] = corr * l_sc[...] + jnp.sum(p, axis=-1, keepdims=True)
    acc_sc[...] = corr * acc_sc[...] + jnp.dot(
        p.astype(v.dtype), v, preferred_element_type=jnp.float32)
    m_sc[...] = m_new

    @pl.when(kv == pl.num_programs(3) - 1)
    def _():
        inv_l = pl.reciprocal(l_sc[...], approx=True)   # EUP slot, ~free
        o_ref[0, 0] = (acc_sc[...] * inv_l).astype(o_ref.dtype)


def flash_attention(q, k, v, mask4, *, compute_dtype=None, tq=128, tk=128):
    """q,k,v: (B,H,S,Dk); mask4: (B,1,Sq,Sk) int8 -> out (B,H,Sq,Dk)."""
    B, H, Sq, Dk = q.shape
    Sk = k.shape[2]
    tq = _pick_tile(Sq, tq)
    tk = _pick_tile(Sk, tk)
    kern = functools.partial(_flash_attn_kernel, scale=1.0 / math.sqrt(Dk),
                             compute_dtype=compute_dtype)
    return pl.pallas_call(
        kern,
        out_shape=jax.ShapeDtypeStruct((B, H, Sq, Dk), q.dtype),
        grid=(B, H, Sq // tq, Sk // tk),
        in_specs=[
            pl.BlockSpec((1, 1, tq, Dk), lambda b, h, qi, ki: (b, h, qi, 0)),
            pl.BlockSpec((1, 1, tk, Dk), lambda b, h, qi, ki: (b, h, ki, 0)),
            pl.BlockSpec((1, 1, tk, Dk), lambda b, h, qi, ki: (b, h, ki, 0)),
            pl.BlockSpec((1, 1, tq, tk), lambda b, h, qi, ki: (b, 0, qi, ki)),
        ],
        out_specs=pl.BlockSpec((1, 1, tq, Dk), lambda b, h, qi, ki: (b, h, qi, 0)),
        scratch_shapes=[
            pltpu.VMEM((tq, 1), jnp.float32),   # running max
            pltpu.VMEM((tq, 1), jnp.float32),   # running sum
            pltpu.VMEM((tq, Dk), jnp.float32),  # output accumulator
        ],
        compiler_params=pltpu.CompilerParams(
            dimension_semantics=("parallel", "parallel", "parallel", "arbitrary"),
            vmem_limit_bytes=_VMEM_LIMIT),
        cost_estimate=pl.CostEstimate(
            flops=4 * B * H * Sq * Sk * Dk,
            transcendentals=B * H * Sq * Sk,
            bytes_accessed=4 * B * H * (2 * Sq * Dk + 2 * Sk * Dk) + B * Sq * Sk),
    )(q, k, v, mask4)


# ---------------------------------------------------------------------------
# Multi-head attention / feed-forward wrappers (glue in JAX, hot paths Pallas)
# ---------------------------------------------------------------------------
def _split_heads(x2d, B, S, h, dk):
    return x2d.reshape(B, S, h, dk).transpose(0, 2, 1, 3)      # (B, h, S, dk)


def _merge_heads(x, B, S, D):
    return x.transpose(0, 2, 1, 3).reshape(B * S, D)


def mha_self(p, x, mask3, h, compute_dtype):
    """Self-attention with a fused QKV projection (single pallas_call)."""
    B, S, D = x.shape
    dk = D // h
    qkv = linear(x.reshape(B * S, D), p["w_qkv_t"], p["b_qkv"],
                 compute_dtype=compute_dtype)                   # (B*S, 3D)
    qkv = qkv.reshape(B, S, 3, h, dk).transpose(2, 0, 3, 1, 4)  # (3, B, h, S, dk)
    q, k, v = qkv[0], qkv[1], qkv[2]
    mask4 = mask3[:, None, :, :].astype(jnp.int8)
    o = flash_attention(q, k, v, mask4, compute_dtype=compute_dtype)
    out = linear(_merge_heads(o, B, S, D), p["w_o_t"], p["b_o"],
                 compute_dtype=compute_dtype)
    return out.reshape(B, S, D)


def mha_cross(p, x, memory, mask3, h, compute_dtype):
    """Cross-attention: Q from x, fused K/V projection from memory."""
    B, St, D = x.shape
    Ss = memory.shape[1]
    dk = D // h
    q = linear(x.reshape(B * St, D), p["w_q_t"], p["b_q"],
               compute_dtype=compute_dtype)
    q = _split_heads(q, B, St, h, dk)
    kv = linear(memory.reshape(B * Ss, D), p["w_kv_t"], p["b_kv"],
                compute_dtype=compute_dtype)                    # (B*Ss, 2D)
    kv = kv.reshape(B, Ss, 2, h, dk).transpose(2, 0, 3, 1, 4)
    k, v = kv[0], kv[1]
    mask4 = mask3[:, None, :, :].astype(jnp.int8)
    o = flash_attention(q, k, v, mask4, compute_dtype=compute_dtype)
    out = linear(_merge_heads(o, B, St, D), p["w_o_t"], p["b_o"],
                 compute_dtype=compute_dtype)
    return out.reshape(B, St, D)


def feed_forward(p, x, compute_dtype):
    B, S, D = x.shape
    h1 = linear(x.reshape(B * S, D), p["w1_t"], p["b1"],
                activation="relu", compute_dtype=compute_dtype)
    out = linear(h1, p["w2_t"], p["b2"], compute_dtype=compute_dtype)
    return out.reshape(B, S, D)


def decoder_layer(params, x, memory, src_mask, tgt_mask, *, compute_dtype=None):
    """DecoderLayer forward (pre-norm sublayers, residuals, dropout=identity)."""
    h = params["h"]
    nx = layer_norm(x, params["ln0_a"], params["ln0_b"])
    x = x + mha_self(params["self_attn"], nx, tgt_mask, h, compute_dtype)

    nx = layer_norm(x, params["ln1_a"], params["ln1_b"])
    x = x + mha_cross(params["src_attn"], nx, memory, src_mask, h, compute_dtype)

    nx = layer_norm(x, params["ln2_a"], params["ln2_b"])
    x = x + feed_forward(params["ff"], nx, compute_dtype)
    return x


# ---------------------------------------------------------------------------
# Pure-JAX reference (mirrors the PyTorch code in eval mode)
# ---------------------------------------------------------------------------
def _ln_ref(x, a, b, eps=1e-6):
    mean = jnp.mean(x, -1, keepdims=True)
    std = jnp.std(x, -1, keepdims=True, ddof=1)     # torch.std is unbiased
    return a * (x - mean) / (std + eps) + b


def _attn_ref(q, k, v, mask4):
    dk = q.shape[-1]
    s = jnp.einsum("bhqd,bhkd->bhqk", q, k) / math.sqrt(dk)
    s = jnp.where(mask4 == 0, -1e9, s)
    p = jax.nn.softmax(s, axis=-1)
    return jnp.einsum("bhqk,bhkd->bhqd", p, v)


def _mha_ref(x_q, x_kv, wq_t, bq, wk_t, bk, wv_t, bv, wo_t, bo, mask3, h):
    B, Sq, D = x_q.shape
    Sk = x_kv.shape[1]
    dk = D // h

    def sh(y, S):
        return y.reshape(B, S, h, dk).transpose(0, 2, 1, 3)

    q = sh(x_q @ wq_t + bq, Sq)
    k = sh(x_kv @ wk_t + bk, Sk)
    v = sh(x_kv @ wv_t + bv, Sk)
    o = _attn_ref(q, k, v, mask3[:, None, :, :])
    return o.transpose(0, 2, 1, 3).reshape(B, Sq, D) @ wo_t + bo


def reference_decoder_layer(params, x, memory, src_mask, tgt_mask):
    D = x.shape[-1]
    h = params["h"]
    sa, ca, ff = params["self_attn"], params["src_attn"], params["ff"]

    nx = _ln_ref(x, params["ln0_a"], params["ln0_b"])
    x = x + _mha_ref(nx, nx,
                     sa["w_qkv_t"][:, :D], sa["b_qkv"][:D],
                     sa["w_qkv_t"][:, D:2 * D], sa["b_qkv"][D:2 * D],
                     sa["w_qkv_t"][:, 2 * D:], sa["b_qkv"][2 * D:],
                     sa["w_o_t"], sa["b_o"], tgt_mask, h)

    nx = _ln_ref(x, params["ln1_a"], params["ln1_b"])
    x = x + _mha_ref(nx, memory,
                     ca["w_q_t"], ca["b_q"],
                     ca["w_kv_t"][:, :D], ca["b_kv"][:D],
                     ca["w_kv_t"][:, D:], ca["b_kv"][D:],
                     ca["w_o_t"], ca["b_o"], src_mask, h)

    nx = _ln_ref(x, params["ln2_a"], params["ln2_b"])
    x = x + jnp.maximum(nx @ ff["w1_t"] + ff["b1"], 0.0) @ ff["w2_t"] + ff["b2"]
    return x


def init_params(key, h, d_model, d_ff):
    ki = iter(jax.random.split(key, 16))

    def lin_t(n_in, n_out):
        # nn.Linear init, stored pre-transposed as W^T: (n_in, n_out)
        s = 1.0 / math.sqrt(n_in)
        w = jax.random.uniform(next(ki), (n_in, n_out), jnp.float32, -s, s)
        b = jax.random.uniform(next(ki), (n_out,), jnp.float32, -s, s)
        return w, b

    w_qkv_t, b_qkv = lin_t(d_model, 3 * d_model)
    w_o0_t, b_o0 = lin_t(d_model, d_model)
    w_q_t, b_q = lin_t(d_model, d_model)
    w_kv_t, b_kv = lin_t(d_model, 2 * d_model)
    w_o1_t, b_o1 = lin_t(d_model, d_model)
    w1_t, b1 = lin_t(d_model, d_ff)
    w2_t, b2 = lin_t(d_ff, d_model)

    ones = jnp.ones((d_model,), jnp.float32)
    zeros = jnp.zeros((d_model,), jnp.float32)
    return {
        "h": h,
        "ln0_a": ones, "ln0_b": zeros,
        "ln1_a": ones, "ln1_b": zeros,
        "ln2_a": ones, "ln2_b": zeros,
        "self_attn": {"w_qkv_t": w_qkv_t, "b_qkv": b_qkv,
                      "w_o_t": w_o0_t, "b_o": b_o0},
        "src_attn": {"w_q_t": w_q_t, "b_q": b_q, "w_kv_t": w_kv_t, "b_kv": b_kv,
                     "w_o_t": w_o1_t, "b_o": b_o1},
        "ff": {"w1_t": w1_t, "b1": b1, "w2_t": w2_t, "b2": b2},
    }


if __name__ == "__main__":
    B, S_tgt, S_src, d_model, h, d_ff = 2, 8, 8, 32, 4, 128
    root = jax.random.PRNGKey(0)
    kp, kx, km = jax.random.split(root, 3)

    params = init_params(kp, h, d_model, d_ff)
    x = jax.random.normal(kx, (B, S_tgt, d_model), jnp.float32)
    memory = jax.random.normal(km, (B, S_src, d_model), jnp.float32)
    tgt_mask = jnp.broadcast_to(jnp.tril(jnp.ones((S_tgt, S_tgt), jnp.int32)),
                                (B, S_tgt, S_tgt))
    src_mask = jnp.ones((B, S_tgt, S_src), jnp.int32)

    out = decoder_layer(params, x, memory, src_mask, tgt_mask)
    out = jax.block_until_ready(out)

    ref = reference_decoder_layer(params, x, memory, src_mask, tgt_mask)
    np.testing.assert_allclose(np.asarray(out), np.asarray(ref),
                               rtol=1e-2, atol=1e-2)

    # bf16-MXU-operand path (fp32 accumulation, fp32 softmax/layernorm) — the
    # recommended configuration for v6e/v7x; loose tolerance due to bf16 inputs.
    out_bf16 = decoder_layer(params, x, memory, src_mask, tgt_mask,
                             compute_dtype=jnp.bfloat16)
    out_bf16 = jax.block_until_ready(out_bf16)
    assert float(jnp.max(jnp.abs(out_bf16 - ref))) < 0.25

    print("KERNEL_OK")
</pallas_src>

<mosaic_0001>
module attributes {stable_mosaic.version = 11 : i64} {
  func.func @_layernorm_kernel(%arg0: i32, %arg1: memref<16x32xf32, #tpu.memory_space<vmem>>, %arg2: memref<1x32xf32, #tpu.memory_space<vmem>>, %arg3: memref<1x32xf32, #tpu.memory_space<vmem>>, %arg4: memref<16x32xf32, #tpu.memory_space<vmem>>) attributes {dimension_semantics = [#tpu.dimension_semantics<parallel>], iteration_bounds = array<i64: 1>, scalar_prefetch = 0 : i64, scratch_operands = 0 : i64, tpu.core_type = #tpu.core_type<tc>, window_params = [{transform_indices = @transform_0, window_bounds = array<i64: 16, 32>}, {pipeline_mode = #tpu.pipeline_mode<synchronous>, transform_indices = @transform_1, window_bounds = array<i64: 1, 32>}, {pipeline_mode = #tpu.pipeline_mode<synchronous>, transform_indices = @transform_2, window_bounds = array<i64: 1, 32>}, {transform_indices = @transform_3, window_bounds = array<i64: 16, 32>}]} {
    %c0 = arith.constant 0 : index
    %c0_0 = arith.constant 0 : index
    %0 = vector.load %arg1[%c0, %c0_0] : memref<16x32xf32, #tpu.memory_space<vmem>>, vector<16x32xf32>
    %cst = arith.constant dense<0.000000e+00> : vector<16xf32>
    %1 = vector.multi_reduction <add>, %0, %cst [1] : vector<16x32xf32> to vector<16xf32>
    %2 = vector.shape_cast %1 : vector<16xf32> to vector<16x1xf32>
    %cst_1 = arith.constant 3.200000e+01 : f32
    %3 = vector.broadcast %cst_1 : f32 to vector<16x1xf32>
    %4 = arith.divf %2, %3 : vector<16x1xf32>
    %5 = vector.broadcast %4 : vector<16x1xf32> to vector<16x32xf32>
    %6 = arith.subf %0, %5 : vector<16x32xf32>
    %7 = arith.mulf %6, %6 : vector<16x32xf32>
    %cst_2 = arith.constant dense<0.000000e+00> : vector<16xf32>
    %8 = vector.multi_reduction <add>, %7, %cst_2 [1] : vector<16x32xf32> to vector<16xf32>
    %9 = vector.shape_cast %8 : vector<16xf32> to vector<16x1xf32>
    %cst_3 = arith.constant 3.100000e+01 : f32
    %10 = vector.broadcast %cst_3 : f32 to vector<16x1xf32>
    %11 = arith.divf %9, %10 : vector<16x1xf32>
    %c0_4 = arith.constant 0 : index
    %c0_5 = arith.constant 0 : index
    %12 = vector.load %arg2[%c0_4, %c0_5] : memref<1x32xf32, #tpu.memory_space<vmem>>, vector<1x32xf32>
    %13 = vector.broadcast %12 : vector<1x32xf32> to vector<16x32xf32>
    %14 = arith.mulf %13, %6 : vector<16x32xf32>
    %15 = math.sqrt %11 : vector<16x1xf32>
    %cst_6 = arith.constant 9.99999997E-7 : f32
    %16 = vector.broadcast %cst_6 : f32 to vector<16x1xf32>
    %17 = arith.addf %15, %16 : vector<16x1xf32>
    %18 = vector.broadcast %17 : vector<16x1xf32> to vector<16x32xf32>
    %19 = arith.divf %14, %18 : vector<16x32xf32>
    %c0_7 = arith.constant 0 : index
    %c0_8 = arith.constant 0 : index
    %20 = vector.load %arg3[%c0_7, %c0_8] : memref<1x32xf32, #tpu.memory_space<vmem>>, vector<1x32xf32>
    %21 = vector.broadcast %20 : vector<1x32xf32> to vector<16x32xf32>
    %22 = arith.addf %19, %21 : vector<16x32xf32>
    %c0_9 = arith.constant 0 : index
    %c0_10 = arith.constant 0 : index
    %23 = vector.load %arg4[%c0_9, %c0_10] : memref<16x32xf32, #tpu.memory_space<vmem>>, vector<16x32xf32>
    tpu.vector_store %arg4[%c0_9, %c0_10], %22 {strides = array<i32>} : memref<16x32xf32, #tpu.memory_space<vmem>>, vector<16x32xf32>,
    return
  }
  func.func @transform_0(%arg0: i32) -> (i32, i32) {
    %c0_i32 = arith.constant 0 : i32
    %c0_i32_0 = arith.constant 0 : i32
    return %arg0, %c0_i32 : i32, i32
  }
  func.func @transform_1(%arg0: i32) -> (i32, i32) {
    %c0_i32 = arith.constant 0 : i32
    %c0_i32_0 = arith.constant 0 : i32
    %c0_i32_1 = arith.constant 0 : i32
    return %c0_i32, %c0_i32_0 : i32, i32
  }
  func.func @transform_2(%arg0: i32) -> (i32, i32) {
    %c0_i32 = arith.constant 0 : i32
    %c0_i32_0 = arith.constant 0 : i32
    %c0_i32_1 = arith.constant 0 : i32
    return %c0_i32, %c0_i32_0 : i32, i32
  }
  func.func @transform_3(%arg0: i32) -> (i32, i32) {
    %c0_i32 = arith.constant 0 : i32
    %c0_i32_0 = arith.constant 0 : i32
    return %arg0, %c0_i32 : i32, i32
  }
}

</mosaic_0001>

<bundles_post_ra>
// kernel: tpu_custom_call.1
= control target key start
LH: loop header
LB: loop body
LE: loop exit
PB: predicated region body
PF: predicated region fallthrough
CT: control target
= control target key end

     0   :  { %8 = vsyncpa [#allocation3], 0  ;;  %s239_s0 = inlined_call_operand.hbm [shape: f32[16,32], index: 0, kind: input, shape index: {}]   ;;  %s240_s1 = inlined_call_operand.vmem [shape: f32[1,32], index: 1, kind: input, shape index: {}]   ;;  %s241_s2 = inlined_call_operand.vmem [shape: f32[1,32], index: 2, kind: input, shape index: {}]   ;;  %s242_s3 = inlined_call_operand.hbm [shape: f32[16,32], index: 3, kind: output, shape index: {}]  }
   0x1   :  { %9 = vsyncpa [#allocation4], 0  ;;  %s173_s12 = smov [#allocation2]   ;;  %s125_s16 = scalar_lea.hbm %s239_s0, 256 }
   0x2   :  { %s15_s13 = sshll.u32 %s173_s12, 4  ;;  %p126_p0 = scmp.ne.s32.totalorder %s239_s0, %s125_s16  ;;  %s16_s13 = int_to_ptr.vmem [resolvable:$true] %s15_s13 }
   0x3   :  { %p129_p1 = scmp.lt.u32.totalorder %s125_s16, %s239_s0 }
   0x5   :  { %p131_p2 = pnand %p129_p1, %p126_p0 }
   0x7   :  { %134 = shalt.err (!%p131_p2)
}
   0x8   :  { %s135_s21 = scalar_lea.vmem %s16_s13, 256  ;;  %p140_p4 = scmp.lt.s32.totalorder %s16_s13, %s16_s13 }
   0x9   :  { %p136_p3 = scmp.ne.s32.totalorder %s16_s13, %s135_s21  ;;  %p141_p5 = scmp.lt.s32.totalorder %s135_s21, %s135_s21 }
   0xb   :  { %p142_p6 = por %p141_p5, %p140_p4 }
   0xd   :  { %p143_p7 = pnand %p142_p6, %p136_p3 }
   0xf   :  { %146 = shalt.err (!%p143_p7)
}
  0x10   :  { %s174_s22 = smov 128   ;;  %s175_s23 = smov 8  }
  0x11   :  { %21 = dma.hbm_to_vmem [thread:$0]  %s239_s0, 256, %s16_s13, [#allocation3], %s174_s22, %s174_s22, %s175_s23  }
  0x12   :  { %169 = dma.done.wait [#allocation3], 256  }
  0x13   :  { %170 = vsyncadd [#allocation3], 4294967040  ;;  %vm31_vm0 = vcmask 261120   ;;  %v29_v0 = vld [vmem:[#allocation2] sm:$0xff]  ;;  %v30_v1 = vld [vmem:[#allocation2 + $0x8] sm:$0xff]  ;;  %s176_s29 = smov [#allocation5]  }
  0x14   :  { %v32_v2 = vsel %vm31_vm0, %v29_v0, 0.0  ;;  %v35_v3 = vsel %vm31_vm0, %v30_v1, 0.0  ;;  %v111_v30 = vld [vmem:[%s240_s1] ss:$0 sm:$0xff]  ;;  %s99_s30 = sshll.u32 %s176_s29, 4  ;;  %s100_s30 = int_to_ptr.vmem [resolvable:$true] %s99_s30 }
  0x15   :  { %33 = vadd.xlane.f32.xlu0 %v32_v2  ;;  %v112_v33 = vld [vmem:[%s241_s2] ss:$0 sm:$0xff]  ;;  %s147_s1 = scalar_lea.vmem %s100_s30, 256  ;;  %p152_p9 = scmp.lt.s32.totalorder %s100_s30, %s100_s30 }
  0x16   :  { %p148_p8 = scmp.ne.s32.totalorder %s100_s30, %s147_s1  ;;  %p153_p10 = scmp.lt.s32.totalorder %s147_s1, %s147_s1 }
  0x18   :  { %p154_p11 = por %p153_p10, %p152_p9 }
  0x19   :  { %36 = vadd.xlane.f32.xlu0 %v35_v3 }
  0x1a   :  { %p155_p12 = pnand %p154_p11, %p148_p8 }
  0xa2   :  { %v34_v4 = vpop.xlane.xlu0 %33 }
  0xa3   :  { %v39_v5 = vmul.f32 0.03125, %v34_v4 }
  0xa5   :  { %v41_v6 = vsub.f32 %v29_v0, %v39_v5 }
  0xa6   :  { %v37_v7 = vpop.xlane.xlu0 %36 }
  0xa7   :  { %v40_v8 = vmul.f32 0.03125, %v37_v7  ;;  %v43_v9 = vmul.f32 %v41_v6, %v41_v6  ;;  %v61_v31 = vmul.f32 %v111_v30, %v41_v6 }
  0xa9   :  { %v42_v10 = vsub.f32 %v30_v1, %v40_v8  ;;  %v45_v11 = vsel %vm31_vm0, %v43_v9, 0.0 }
  0xaa   :  { %46 = vadd.xlane.f32.xlu1 %v45_v11 }
  0xab   :  { %v44_v12 = vmul.f32 %v42_v10, %v42_v10  ;;  %v62_v35 = vmul.f32 %v111_v30, %v42_v10 }
  0xad   :  { %v48_v13 = vsel %vm31_vm0, %v44_v12, 0.0 }
  0xae   :  { %49 = vadd.xlane.f32.xlu1 %v48_v13 }
 0x137   :  { %v47_v14 = vpop.xlane.xlu1 %46 }
 0x138   :  { %v52_v15 = vmul.f32 0.032258064, %v47_v14 }
 0x13a   :  { %117 = vrsqrt.f32 %v52_v15  ;;  %vm65_vm1 = vcmp.eq.f32.partialorder %v52_v15, inf  ;;  %v68_v20 = vand.u32 2147483648, %v52_v15  ;;  %vm67_vm2 = vcmp.eq.f32.partialorder %v52_v15, 0.0 }
 0x13b   :  { %v50_v16 = vpop.xlane.xlu1 %49 }
 0x13c   :  { %v53_v17 = vmul.f32 0.032258064, %v50_v16 }
 0x13e   :  { %119 = vrsqrt.f32 %v53_v17  ;;  %vm72_vm3 = vcmp.eq.f32.partialorder %v53_v17, inf  ;;  %v75_v26 = vand.u32 2147483648, %v53_v17  ;;  %vm74_vm4 = vcmp.eq.f32.partialorder %v53_v17, 0.0 }
 0x144   :  { %v118_v18 = vpop.eup %117 }
 0x145   :  { %v64_v19 = vmul.f32 %v118_v18, %v52_v15 }
 0x147   :  { %v66_v21 = vsel %vm65_vm1, %v52_v15, %v64_v19 }
 0x148   :  { %v120_v22 = vpop.eup %119  ;;  %v69_v23 = vsel %vm67_vm2, %v68_v20, %v66_v21 }
 0x149   :  { %v77_v24 = vadd.f32 1e-06, %v69_v23  ;;  %v71_v25 = vmul.f32 %v120_v22, %v53_v17 }
 0x14b   :  { %v73_v27 = vsel %vm72_vm3, %v53_v17, %v71_v25  ;;  %121 = vrcp.f32 %v77_v24 }
 0x14c   :  { %v76_v28 = vsel %vm74_vm4, %v75_v26, %v73_v27 }
 0x14d   :  { %v78_v29 = vadd.f32 1e-06, %v76_v28 }
 0x14f   :  { %123 = vrcp.f32 %v78_v29 }
 0x155   :  { %v122_v32 = vpop.eup %121 }
 0x156   :  { %v80_v34 = vmul.f32 %v122_v32, %v61_v31 }
 0x158   :  { %v90_v36 = vadd.f32 %v112_v33, %v80_v34 }
 0x159   :  { %v124_v37 = vpop.eup %123 }
 0x15a   :  { %v82_v38 = vmul.f32 %v124_v37, %v62_v35  ;;  %92 = vst.msk [vmem:[#allocation5] sm:$0xff] %vm31_vm0, %v90_v36 }
 0x15c   :  { %v91_v39 = vadd.f32 %v112_v33, %v82_v38 }
 0x15e   :  { %93 = vst.msk [vmem:[#allocation5 + $0x8] sm:$0xff] %vm31_vm0, %v91_v39 }
 0x15f   :  { %158 = shalt.err (!%p155_p12)
}
 0x160   :  { %s159_s5 = scalar_lea.hbm %s242_s3, 256 }
 0x161   :  { %p160_p13 = scmp.ne.s32.totalorder %s242_s3, %s159_s5  ;;  %p163_p0 = scmp.lt.u32.totalorder %s159_s5, %s242_s3 }
 0x163   :  { %p165_p1 = pnand %p163_p0, %p160_p13 }
 0x165   :  { %168 = shalt.err (!%p165_p1)
}
 0x166   :  { %105 = dma.vmem_to_hbm [thread:$0]  %s100_s30, 256, %s242_s3, [#allocation4], %s174_s22, %s174_s22, %s175_s23  }
 0x167   :  { %171 = dma.done.wait [#allocation4], 256  }
 0x168   :  { %172 = vsyncadd [#allocation4], 4294967040 }
 0x169   :  { %109 = vsyncpa [#allocation3], 1 }
 0x16a   :  { %110 = vsyncpa [#allocation4], 1 }

</bundles_post_ra>
